<compile_context>
chip_gen: v5e
topology: v5e:2x2
jax: 0.10.0
libtpu: 0.0.40
codegen_flags: <defaults>
</compile_context>

<pallas_src>
import jax
import jax.numpy as jnp
from jax.experimental import pallas as pl
from jax.experimental.pallas import tpu as pltpu


# ----------------------------------------------------------------------------
# Fused kernel: one modality = 2 x GConv_meta + SLAttention
#
#   h_i   = emb @ Wfc_i^T + bfc_i                     (nn.Linear)
#   o_i   = meta_i @ h_i + bias_i                     (torch.spmm + bias)
#   o_i   = PReLU(o_i; alpha_i)
#   f     = tanh([o_1 ; o_2] @ Wsla^T + bsla)         (batched SLA projection)
#   m_i   = mean(f rows of branch i)                  (1, H)
#   s_i   = a . m_i                                   (1, 1)
#   beta  = softmax([s_1, s_2])
#   out   = beta_1 * o_1 + beta_2 * o_2
# ----------------------------------------------------------------------------
def fused_meta_branch_kernel(alpha_ref,                       # SMEM (2,) f32
                             emb_ref,                         # (N, C_in)
                             meta1_ref, meta2_ref,            # (N, N)
                             w1_ref, w2_ref,                  # (C_in, C_out)
                             bfc1_ref, bfc2_ref,              # (1, C_out)
                             bias1_ref, bias2_ref,            # (1, C_out)
                             wsla_ref,                        # (C_out, H)
                             bsla_ref,                        # (1, H)
                             a_ref,                           # (1, H)
                             out_ref):                        # (N, C_out)
    emb = emb_ref[...]

    # GConv linear projections (MXU, f32 accumulate).
    # NOTE: on v6e/v7x these could take bf16 inputs with f32 accumulation for
    # ~2x MXU throughput at large N; kept f32 here to match the reference.
    h1 = jnp.dot(emb, w1_ref[...], preferred_element_type=jnp.float32) + bfc1_ref[...]
    h2 = jnp.dot(emb, w2_ref[...], preferred_element_type=jnp.float32) + bfc2_ref[...]

    # Dense "spmm" + extra bias.
    o1 = jnp.dot(meta1_ref[...], h1, preferred_element_type=jnp.float32) + bias1_ref[...]
    o2 = jnp.dot(meta2_ref[...], h2, preferred_element_type=jnp.float32) + bias2_ref[...]

    # PReLU with scalar alphas read from SMEM (no VMEM tile, no vector load).
    a1 = alpha_ref[0]
    a2 = alpha_ref[1]
    o1 = jnp.where(o1 > 0, o1, a1 * o1)
    o2 = jnp.where(o2 > 0, o2, a2 * o2)

    # SLAttention: batch both views into a single MXU matmul.
    stacked = jnp.concatenate([o1, o2], axis=0)               # (2N, C_out)
    f = jnp.tanh(jnp.dot(stacked, wsla_ref[...],
                         preferred_element_type=jnp.float32) + bsla_ref[...])

    n = o1.shape[0]
    m1 = jnp.mean(f[:n, :], axis=0, keepdims=True)            # (1, H)
    m2 = jnp.mean(f[n:, :], axis=0, keepdims=True)            # (1, H)

    a_vec = a_ref[...]                                        # (1, H)
    s1 = jnp.sum(a_vec * m1, axis=1, keepdims=True)           # (1, 1)
    s2 = jnp.sum(a_vec * m2, axis=1, keepdims=True)           # (1, 1)

    mx = jnp.maximum(s1, s2)
    e1 = jnp.exp(s1 - mx)
    e2 = jnp.exp(s2 - mx)
    inv = pl.reciprocal(e1 + e2, approx=True)                 # EUP slot
    beta1 = e1 * inv
    beta2 = e2 * inv

    out_ref[...] = beta1 * o1 + beta2 * o2


def fused_meta_branch(emb, meta1, meta2, p1, p2, sla):
    """One fused pallas_call for a modality (2x GConv_meta + SLAttention)."""
    n, _ = emb.shape
    c_out = p1["w_t"].shape[1]

    alphas = jnp.concatenate([p1["alpha"], p2["alpha"]])      # (2,) f32 -> SMEM

    smem_spec = pl.BlockSpec(memory_space=pltpu.MemorySpace.SMEM)
    vmem_spec = pl.BlockSpec(memory_space=pltpu.MemorySpace.VMEM)

    return pl.pallas_call(
        fused_meta_branch_kernel,
        out_shape=jax.ShapeDtypeStruct((n, c_out), jnp.float32),
        in_specs=[smem_spec] + [vmem_spec] * 12,
        out_specs=vmem_spec,
    )(alphas, emb, meta1, meta2,
      p1["w_t"], p2["w_t"], p1["b_fc"], p2["b_fc"], p1["bias"], p2["bias"],
      sla["w_t"], sla["b"], sla["a"])


def meta_emb_forward(emb, meta, params):
    meta_mi_emb = fused_meta_branch(
        emb["miRNA"], meta["miRNA"]["mdm"], meta["miRNA"]["mdmdm"],
        params["mdm"], params["mdmdm"], params["sla"])
    meta_di_emb = fused_meta_branch(
        emb["disease"], meta["disease"]["dmd"], meta["disease"]["dmdmd"],
        params["dmd"], params["dmdmd"], params["sla"])
    return meta_mi_emb, meta_di_emb


# ----------------------------------------------------------------------------
# Parameter construction (deterministic, mimicking the PyTorch inits)
# ----------------------------------------------------------------------------
def xavier_normal(key, shape, gain=1.414):
    fan_out, fan_in = shape
    std = gain * jnp.sqrt(2.0 / (fan_in + fan_out))
    return std * jax.random.normal(key, shape, dtype=jnp.float32)


def make_gconv_params(key, c_in, c_out):
    w = xavier_normal(key, (c_out, c_in))                     # nn.Linear weight
    return {
        "w_t":   jnp.transpose(w),                            # (C_in, C_out)
        "b_fc":  jnp.zeros((1, c_out), jnp.float32),          # weight_init -> 0.0
        "bias":  jnp.full((1, c_out), 0.001, jnp.float32),    # extra bias param
        "alpha": jnp.full((1,), 0.25, jnp.float32),           # nn.PReLU default
    }


def make_sla_params(key, hidden):
    k1, k2, k3 = jax.random.split(key, 3)
    w = xavier_normal(k1, (hidden, hidden))
    bound = 1.0 / float(jnp.sqrt(jnp.float32(hidden)))
    return {
        "w_t": jnp.transpose(w),
        # PyTorch nn.Linear default bias init: U(-1/sqrt(fan_in), 1/sqrt(fan_in))
        "b":   jax.random.uniform(k2, (1, hidden), jnp.float32, -bound, bound),
        "a":   xavier_normal(k3, (1, hidden)),
    }


# ----------------------------------------------------------------------------
# Pure-JAX reference (mirrors the PyTorch forward with dropout = identity)
# ----------------------------------------------------------------------------
def _reference_forward(emb, meta, params):
    def gconv(x, m, p):
        h = x @ p["w_t"] + p["b_fc"]
        o = m @ h + p["bias"]
        return jnp.where(o > 0, o, p["alpha"][0] * o)

    def sla(v1, v2, p):
        f1 = jnp.tanh(v1 @ p["w_t"] + p["b"]).mean(axis=0)
        f2 = jnp.tanh(v2 @ p["w_t"] + p["b"]).mean(axis=0)
        s = jnp.stack([jnp.sum(p["a"][0] * f1), jnp.sum(p["a"][0] * f2)])
        b = jax.nn.softmax(s)
        return b[0] * v1 + b[1] * v2

    mdm = gconv(emb["miRNA"], meta["miRNA"]["mdm"], params["mdm"])
    mdmdm = gconv(emb["miRNA"], meta["miRNA"]["mdmdm"], params["mdmdm"])
    dmd = gconv(emb["disease"], meta["disease"]["dmd"], params["dmd"])
    dmdmd = gconv(emb["disease"], meta["disease"]["dmdmd"], params["dmdmd"])
    return sla(mdm, mdmdm, params["sla"]), sla(dmd, dmdmd, params["sla"])


if __name__ == "__main__":
    # args: meta_inchannels=32, meta_outchannels=32, sla_hidden=32, sla_dropout=0
    C_IN, C_OUT, HIDDEN = 32, 32, 32
    N_MI, N_DI = 16, 16

    root = jax.random.PRNGKey(0)
    keys = jax.random.split(root, 12)

    emb = {
        "miRNA":   jax.random.normal(keys[0], (N_MI, C_IN), jnp.float32),
        "disease": jax.random.normal(keys[1], (N_DI, C_IN), jnp.float32),
    }
    meta = {
        "miRNA": {
            "mdm":   jax.random.uniform(keys[2], (N_MI, N_MI), jnp.float32),
            "mdmdm": jax.random.uniform(keys[3], (N_MI, N_MI), jnp.float32),
        },
        "disease": {
            "dmd":   jax.random.uniform(keys[4], (N_DI, N_DI), jnp.float32),
            "dmdmd": jax.random.uniform(keys[5], (N_DI, N_DI), jnp.float32),
        },
    }

    params = {
        "mdm":   make_gconv_params(keys[6], C_IN, C_OUT),
        "mdmdm": make_gconv_params(keys[7], C_IN, C_OUT),
        "dmd":   make_gconv_params(keys[8], C_IN, C_OUT),
        "dmdmd": make_gconv_params(keys[9], C_IN, C_OUT),
        "sla":   make_sla_params(keys[10], HIDDEN),
    }

    meta_mi_emb, meta_di_emb = meta_emb_forward(emb, meta, params)
    jax.block_until_ready((meta_mi_emb, meta_di_emb))

    assert meta_mi_emb.shape == (N_MI, C_OUT)
    assert meta_di_emb.shape == (N_DI, C_OUT)

    # Correctness check against the pure-JAX reference (tolerance covers the
    # EUP approximate reciprocal used for the 2-way softmax).
    ref_mi, ref_di = _reference_forward(emb, meta, params)
    assert jnp.allclose(meta_mi_emb, ref_mi, rtol=2e-2, atol=2e-2)
    assert jnp.allclose(meta_di_emb, ref_di, rtol=2e-2, atol=2e-2)

    print("KERNEL_OK")
</pallas_src>

<mosaic_0001>
module attributes {stable_mosaic.version = 11 : i64} {
  func.func @fused_meta_branch_kernel(%arg0: memref<2xf32, #tpu.memory_space<smem>>, %arg1: memref<16x32xf32, #tpu.memory_space<vmem>>, %arg2: memref<16x16xf32, #tpu.memory_space<vmem>>, %arg3: memref<16x16xf32, #tpu.memory_space<vmem>>, %arg4: memref<32x32xf32, #tpu.memory_space<vmem>>, %arg5: memref<32x32xf32, #tpu.memory_space<vmem>>, %arg6: memref<1x32xf32, #tpu.memory_space<vmem>>, %arg7: memref<1x32xf32, #tpu.memory_space<vmem>>, %arg8: memref<1x32xf32, #tpu.memory_space<vmem>>, %arg9: memref<1x32xf32, #tpu.memory_space<vmem>>, %arg10: memref<32x32xf32, #tpu.memory_space<vmem>>, %arg11: memref<1x32xf32, #tpu.memory_space<vmem>>, %arg12: memref<1x32xf32, #tpu.memory_space<vmem>>, %arg13: memref<16x32xf32, #tpu.memory_space<vmem>>) attributes {dimension_semantics = [], scalar_prefetch = 0 : i64, scratch_operands = 0 : i64, tpu.core_type = #tpu.core_type<tc>} {
    %c0 = arith.constant 0 : index
    %c0_0 = arith.constant 0 : index
    %0 = vector.load %arg1[%c0, %c0_0] : memref<16x32xf32, #tpu.memory_space<vmem>>, vector<16x32xf32>
    %c0_1 = arith.constant 0 : index
    %c0_2 = arith.constant 0 : index
    %1 = vector.load %arg4[%c0_1, %c0_2] : memref<32x32xf32, #tpu.memory_space<vmem>>, vector<32x32xf32>
    %cst = arith.constant dense<0.000000e+00> : vector<16x32xf32>
    %2 = tpu.matmul %0, %1, %cst {dimension_numbers = #tpu.dot_dimension_numbers<[1], [0], [0], [1], [0, 0, 1, 1], [], []>} : vector<16x32xf32>, vector<32x32xf32>, vector<16x32xf32> -> vector<16x32xf32>
    %c0_3 = arith.constant 0 : index
    %c0_4 = arith.constant 0 : index
    %3 = vector.load %arg6[%c0_3, %c0_4] : memref<1x32xf32, #tpu.memory_space<vmem>>, vector<1x32xf32>
    %4 = vector.broadcast %3 : vector<1x32xf32> to vector<16x32xf32>
    %5 = arith.addf %2, %4 : vector<16x32xf32>
    %c0_5 = arith.constant 0 : index
    %c0_6 = arith.constant 0 : index
    %6 = vector.load %arg5[%c0_5, %c0_6] : memref<32x32xf32, #tpu.memory_space<vmem>>, vector<32x32xf32>
    %cst_7 = arith.constant dense<0.000000e+00> : vector<16x32xf32>
    %7 = tpu.matmul %0, %6, %cst_7 {dimension_numbers = #tpu.dot_dimension_numbers<[1], [0], [0], [1], [0, 0, 1, 1], [], []>} : vector<16x32xf32>, vector<32x32xf32>, vector<16x32xf32> -> vector<16x32xf32>
    %c0_8 = arith.constant 0 : index
    %c0_9 = arith.constant 0 : index
    %8 = vector.load %arg7[%c0_8, %c0_9] : memref<1x32xf32, #tpu.memory_space<vmem>>, vector<1x32xf32>
    %9 = vector.broadcast %8 : vector<1x32xf32> to vector<16x32xf32>
    %10 = arith.addf %7, %9 : vector<16x32xf32>
    %c0_10 = arith.constant 0 : index
    %c0_11 = arith.constant 0 : index
    %11 = vector.load %arg2[%c0_10, %c0_11] : memref<16x16xf32, #tpu.memory_space<vmem>>, vector<16x16xf32>
    %cst_12 = arith.constant dense<0.000000e+00> : vector<16x32xf32>
    %12 = tpu.matmul %11, %5, %cst_12 {dimension_numbers = #tpu.dot_dimension_numbers<[1], [0], [0], [1], [0, 0, 1, 1], [], []>} : vector<16x16xf32>, vector<16x32xf32>, vector<16x32xf32> -> vector<16x32xf32>
    %c0_13 = arith.constant 0 : index
    %c0_14 = arith.constant 0 : index
    %13 = vector.load %arg8[%c0_13, %c0_14] : memref<1x32xf32, #tpu.memory_space<vmem>>, vector<1x32xf32>
    %14 = vector.broadcast %13 : vector<1x32xf32> to vector<16x32xf32>
    %15 = arith.addf %12, %14 : vector<16x32xf32>
    %c0_15 = arith.constant 0 : index
    %c0_16 = arith.constant 0 : index
    %16 = vector.load %arg3[%c0_15, %c0_16] : memref<16x16xf32, #tpu.memory_space<vmem>>, vector<16x16xf32>
    %cst_17 = arith.constant dense<0.000000e+00> : vector<16x32xf32>
    %17 = tpu.matmul %16, %10, %cst_17 {dimension_numbers = #tpu.dot_dimension_numbers<[1], [0], [0], [1], [0, 0, 1, 1], [], []>} : vector<16x16xf32>, vector<16x32xf32>, vector<16x32xf32> -> vector<16x32xf32>
    %c0_18 = arith.constant 0 : index
    %c0_19 = arith.constant 0 : index
    %18 = vector.load %arg9[%c0_18, %c0_19] : memref<1x32xf32, #tpu.memory_space<vmem>>, vector<1x32xf32>
    %19 = vector.broadcast %18 : vector<1x32xf32> to vector<16x32xf32>
    %20 = arith.addf %17, %19 : vector<16x32xf32>
    %c0_20 = arith.constant 0 : index
    %21 = memref.load %arg0[%c0_20] : memref<2xf32, #tpu.memory_space<smem>>
    %c1 = arith.constant 1 : index
    %22 = memref.load %arg0[%c1] : memref<2xf32, #tpu.memory_space<smem>>
    %cst_21 = arith.constant 0.000000e+00 : f32
    %23 = vector.broadcast %cst_21 : f32 to vector<16x32xf32>
    %24 = arith.cmpf ogt, %15, %23 : vector<16x32xf32>
    %25 = vector.broadcast %21 : f32 to vector<16x32xf32>
    %26 = arith.mulf %25, %15 : vector<16x32xf32>
    %27 = arith.select %24, %15, %26 : vector<16x32xi1>, vector<16x32xf32>
    %cst_22 = arith.constant 0.000000e+00 : f32
    %28 = vector.broadcast %cst_22 : f32 to vector<16x32xf32>
    %29 = arith.cmpf ogt, %20, %28 : vector<16x32xf32>
    %30 = vector.broadcast %22 : f32 to vector<16x32xf32>
    %31 = arith.mulf %30, %20 : vector<16x32xf32>
    %32 = arith.select %29, %20, %31 : vector<16x32xi1>, vector<16x32xf32>
    %33 = tpu.concatenate %27, %32 in 0 : vector<16x32xf32>, vector<16x32xf32> -> vector<32x32xf32>
    %c0_23 = arith.constant 0 : index
    %c0_24 = arith.constant 0 : index
    %34 = vector.load %arg10[%c0_23, %c0_24] : memref<32x32xf32, #tpu.memory_space<vmem>>, vector<32x32xf32>
    %cst_25 = arith.constant dense<0.000000e+00> : vector<32x32xf32>
    %35 = tpu.matmul %33, %34, %cst_25 {dimension_numbers = #tpu.dot_dimension_numbers<[1], [0], [0], [1], [0, 0, 1, 1], [], []>} : vector<32x32xf32>, vector<32x32xf32>, vector<32x32xf32> -> vector<32x32xf32>
    %c0_26 = arith.constant 0 : index
    %c0_27 = arith.constant 0 : index
    %36 = vector.load %arg11[%c0_26, %c0_27] : memref<1x32xf32, #tpu.memory_space<vmem>>, vector<1x32xf32>
    %37 = vector.broadcast %36 : vector<1x32xf32> to vector<32x32xf32>
    %38 = arith.addf %35, %37 : vector<32x32xf32>
    %39 = math.tanh %38 : vector<32x32xf32>
    %40 = vector.extract_strided_slice %39 {offsets = [0, 0], sizes = [16, 32], strides = [1, 1]} : vector<32x32xf32> to vector<16x32xf32>
    %cst_28 = arith.constant dense<0.000000e+00> : vector<32xf32>
    %41 = vector.multi_reduction <add>, %40, %cst_28 [0] : vector<16x32xf32> to vector<32xf32>
    %42 = vector.shape_cast %41 : vector<32xf32> to vector<1x32xf32>
    %cst_29 = arith.constant 1.600000e+01 : f32
    %43 = vector.broadcast %cst_29 : f32 to vector<1x32xf32>
    %44 = arith.divf %42, %43 : vector<1x32xf32>
    %45 = vector.extract_strided_slice %39 {offsets = [16, 0], sizes = [16, 32], strides = [1, 1]} : vector<32x32xf32> to vector<16x32xf32>
    %cst_30 = arith.constant dense<0.000000e+00> : vector<32xf32>
    %46 = vector.multi_reduction <add>, %45, %cst_30 [0] : vector<16x32xf32> to vector<32xf32>
    %47 = vector.shape_cast %46 : vector<32xf32> to vector<1x32xf32>
    %cst_31 = arith.constant 1.600000e+01 : f32
    %48 = vector.broadcast %cst_31 : f32 to vector<1x32xf32>
    %49 = arith.divf %47, %48 : vector<1x32xf32>
    %c0_32 = arith.constant 0 : index
    %c0_33 = arith.constant 0 : index
    %50 = vector.load %arg12[%c0_32, %c0_33] : memref<1x32xf32, #tpu.memory_space<vmem>>, vector<1x32xf32>
    %51 = arith.mulf %50, %44 : vector<1x32xf32>
    %cst_34 = arith.constant dense<0.000000e+00> : vector<1xf32>
    %52 = vector.multi_reduction <add>, %51, %cst_34 [1] : vector<1x32xf32> to vector<1xf32>
    %53 = vector.shape_cast %52 : vector<1xf32> to vector<1x1xf32>
    %54 = arith.mulf %50, %49 : vector<1x32xf32>
    %cst_35 = arith.constant dense<0.000000e+00> : vector<1xf32>
    %55 = vector.multi_reduction <add>, %54, %cst_35 [1] : vector<1x32xf32> to vector<1xf32>
    %56 = vector.shape_cast %55 : vector<1xf32> to vector<1x1xf32>
    %57 = arith.maximumf %53, %56 : vector<1x1xf32>
    %58 = arith.subf %53, %57 : vector<1x1xf32>
    %59 = math.exp %58 : vector<1x1xf32>
    %60 = arith.subf %56, %57 : vector<1x1xf32>
    %61 = math.exp %60 : vector<1x1xf32>
    %62 = arith.addf %59, %61 : vector<1x1xf32>
    %63 = tpu.reciprocal %62 {approx = true} : vector<1x1xf32> -> vector<1x1xf32>
    %64 = arith.mulf %59, %63 : vector<1x1xf32>
    %65 = arith.mulf %61, %63 : vector<1x1xf32>
    %66 = vector.broadcast %64 : vector<1x1xf32> to vector<16x32xf32>
    %67 = arith.mulf %66, %27 : vector<16x32xf32>
    %68 = vector.broadcast %65 : vector<1x1xf32> to vector<16x32xf32>
    %69 = arith.mulf %68, %32 : vector<16x32xf32>
    %70 = arith.addf %67, %69 : vector<16x32xf32>
    %c0_36 = arith.constant 0 : index
    %c0_37 = arith.constant 0 : index
    %71 = vector.load %arg13[%c0_36, %c0_37] : memref<16x32xf32, #tpu.memory_space<vmem>>, vector<16x32xf32>
    tpu.vector_store %arg13[%c0_36, %c0_37], %70 {strides = array<i32>} : memref<16x32xf32, #tpu.memory_space<vmem>>, vector<16x32xf32>,
    return
  }
}

</mosaic_0001>

<bundles_post_ra>
// kernel: tpu_custom_call.1
= control target key start
LH: loop header
LB: loop body
LE: loop exit
PB: predicated region body
PF: predicated region fallthrough
CT: control target
= control target key end

     0   :  { %18 = vsyncpa [#allocation5], 0  ;;  %s863_s0 = inlined_call_operand.hbm [shape: f32[2], index: 0, kind: input, shape index: {}]   ;;  %s864_s1 = inlined_call_operand.hbm [shape: f32[16,32], index: 1, kind: input, shape index: {}]   ;;  %s865_s2 = inlined_call_operand.hbm [shape: f32[16,16], index: 2, kind: input, shape index: {}]   ;;  %s866_s3 = inlined_call_operand.hbm [shape: f32[16,16], index: 3, kind: input, shape index: {}]   ;;  %s867_s4 = inlined_call_operand.hbm [shape: f32[32,32], index: 4, kind: input, shape index: {}]   ;;  %s868_s5 = inlined_call_operand.hbm [shape: f32[32,32], index: 5, kind: input, shape index: {}]   ;;  %s869_s6 = inlined_call_operand.vmem [shape: f32[1,32], index: 6, kind: input, shape index: {}]   ;;  %s870_s7 = inlined_call_operand.vmem [shape: f32[1,32], index: 7, kind: input, shape index: {}]   ;;  %s871_s8 = inlined_call_operand.vmem [shape: f32[1,32], index: 8, kind: input, shape index: {}]   ;;  %s872_s9 = inlined_call_operand.vmem [shape: f32[1,32], index: 9, kind: input, shape index: {}]   ;;  %s873_s10 = inlined_call_operand.hbm [shape: f32[32,32], index: 10, kind: input, shape index: {}]   ;;  %s874_s11 = inlined_call_operand.vmem [shape: f32[1,32], index: 11, kind: input, shape index: {}]   ;;  %s875_s12 = inlined_call_operand.vmem [shape: f32[1,32], index: 12, kind: input, shape index: {}]   ;;  %s876_s13 = inlined_call_operand.hbm [shape: f32[16,32], index: 13, kind: output, shape index: {}]  }
   0x1   :  { %19 = vsyncpa [#allocation3], 0 }
   0x2   :  { %20 = vsyncpa [#allocation8], 0 }
   0x3   :  { %21 = vsyncpa [#allocation11], 0 }
   0x4   :  { %22 = vsyncpa [#allocation14], 0 }
   0x5   :  { %23 = vsyncpa [#allocation4], 0  ;;  %s50_s27 = sshll.u32 %s865_s2, 4  ;;  %s689_s28 = smov [#allocation7]   ;;  %s51_s27 = int_to_ptr.hbm [resolvable:$true] %s50_s27 }
   0x6   :  { %s52_s29 = sshll.u32 %s689_s28, 4  ;;  %s76_s15 = sshll.u32 %s867_s4, 4  ;;  %s53_s29 = int_to_ptr.vmem [resolvable:$true] %s52_s29  ;;  %s77_s15 = int_to_ptr.hbm [resolvable:$true] %s76_s15 }
   0x7   :  { %s690_s16 = smov 128   ;;  %s691_s17 = smov 8  }
   0x8   :  { %58 = dma.hbm_to_vmem [thread:$0]  %s51_s27, 256, %s53_s29, [#allocation8], %s690_s16, %s690_s16, %s691_s17  }
   0x9   :  { %s692_s18 = smov [#allocation10]   ;;  %s29_s2 = sshll.u32 %s863_s0, 4  ;;  %s30_s2 = int_to_ptr.hbm [resolvable:$true] %s29_s2 }
   0xa   :  { %s78_s19 = sshll.u32 %s692_s18, 4  ;;  %s37_s23 = sshll.u32 %s864_s1, 4  ;;  %s79_s19 = int_to_ptr.vmem [resolvable:$true] %s78_s19  ;;  %s38_s23 = int_to_ptr.hbm [resolvable:$true] %s37_s23 }
   0xb   :  { %84 = dma.hbm_to_vmem [thread:$0]  %s77_s15, 512, %s79_s19, [#allocation11], %s690_s16, %s690_s16, %s691_s17  }
   0xc   :  { %s693_s24 = smov [#allocation2]   ;;  %s694_s25 = smov [#allocation6]  }
   0xd   :  { %32 = dma.hbm_to_smem %s30_s2, 16, %s693_s24, [#allocation5]  }
   0xe   :  { %s39_s26 = sshll.u32 %s694_s25, 4  ;;  %s63_s29 = sshll.u32 %s866_s3, 4  ;;  %s40_s26 = int_to_ptr.vmem [resolvable:$true] %s39_s26  ;;  %s64_s29 = int_to_ptr.hbm [resolvable:$true] %s63_s29 }
   0xf   :  { %45 = dma.hbm_to_vmem [thread:$0]  %s38_s23, 256, %s40_s26, [#allocation3], %s690_s16, %s690_s16, %s691_s17  }
  0x10   :  { %s89_s14 = sshll.u32 %s868_s5, 4  ;;  %s695_s1 = smov [#allocation9]   ;;  %s90_s14 = int_to_ptr.hbm [resolvable:$true] %s89_s14 }
  0x11   :  { %s65_s15 = sshll.u32 %s695_s1, 4  ;;  %s696_s18 = smov [#allocation12]   ;;  %s66_s15 = int_to_ptr.vmem [resolvable:$true] %s65_s15 }
  0x12   :  { %71 = dma.hbm_to_vmem [thread:$0]  %s64_s29, 256, %s66_s15, [#allocation8], %s690_s16, %s690_s16, %s691_s17  }
  0x13   :  { %s91_s3 = sshll.u32 %s696_s18, 4  ;;  %s110_s21 = sshll.u32 %s873_s10, 4  ;;  %s92_s3 = int_to_ptr.vmem [resolvable:$true] %s91_s3  ;;  %s111_s21 = int_to_ptr.hbm [resolvable:$true] %s110_s21 }
  0x14   :  { %97 = dma.hbm_to_vmem [thread:$0]  %s90_s14, 512, %s92_s3, [#allocation11], %s690_s16, %s690_s16, %s691_s17  }
  0x15   :  { %s697_s5 = smov [#allocation13]  }
  0x16   :  { %s112_s2 = sshll.u32 %s697_s5, 4  ;;  %s113_s2 = int_to_ptr.vmem [resolvable:$true] %s112_s2 }
  0x17   :  { %118 = dma.hbm_to_vmem [thread:$0]  %s111_s21, 512, %s113_s2, [#allocation14], %s690_s16, %s690_s16, %s691_s17  }
  0x18   :  { %677 = dma.done.wait [#allocation5], 16  }
  0x19   :  { %678 = vsyncadd [#allocation5], 4294967280 }
  0x1a   :  { %679 = dma.done.wait [#allocation3], 256  }
  0x1b   :  { %680 = vsyncadd [#allocation3], 4294967040 }
  0x1c   :  { %681 = dma.done.wait [#allocation8], 512  }
  0x1d   :  { %682 = vsyncadd [#allocation8], 4294966784 }
  0x1e   :  { %683 = dma.done.wait [#allocation11], 1024  }
  0x1f   :  { %684 = vsyncadd [#allocation11], 4294966272 }
  0x20   :  { %685 = dma.done.wait [#allocation14], 512  }
  0x21   :  { %686 = vsyncadd [#allocation14], 4294966784 }
  0x22   :  { %151 = sfence }
  0x23   :  { %v157_v0 = vld [vmem:[#allocation10 + $0x18] sm:$0xff]  ;;  %v156_v2 = vld [vmem:[#allocation10 + $0x10] sm:$0xff]  ;;  %v155_v4 = vld [vmem:[#allocation10 + $0x8] sm:$0xff]  ;;  %vm162_vm0 = vcmask 261120   ;;  %vm229_vm1 = vcmask 130048   ;;  %v698_v52 = vmov 16.0  }
  0x24   :  { %v195_v1 = vld [vmem:[#allocation12 + $0x18] sm:$0xff]  ;;  %181 = vmatpush.msra.mxu0 %v157_v0  ;;  %v194_v3 = vld [vmem:[#allocation12 + $0x10] sm:$0xff]  ;;  %v193_v5 = vld [vmem:[#allocation12 + $0x8] sm:$0xff]  ;;  %481 = vrcp.f32 %v698_v52  ;;  %vm392_vm7 = vcmask 253952   ;;  %s427_s14 = sshll.u32 %s876_s13, 4  ;;  %s428_s14 = int_to_ptr.hbm [resolvable:$true] %s427_s14 }
  0x25   :  { %212 = vmatpush.msra.mxu1 %v195_v1  ;;  %v154_v6 = vld [vmem:[#allocation10] sm:$0xff]  ;;  %v152_v8 = vld [vmem:[#allocation6] sm:$0xff]  ;;  %v153_v9 = vld [vmem:[#allocation6 + $0x8] sm:$0xff] }
  0x26   :  { %182 = vmatpush.msra.mxu0 %v156_v2  ;;  %v192_v7 = vld [vmem:[#allocation12] sm:$0xff]  ;;  %v477_v12 = vld [vmem:[%s870_s7] ss:$0 sm:$0xff]  ;;  %v224_v21 = vld [vmem:[#allocation7 + $0x8] sm:$0xff]  ;;  %s452_s7 = sld [smem:[#allocation2 + $0x1]] }
  0x27   :  { %213 = vmatpush.msra.mxu1 %v194_v3  ;;  %v476_v13 = vld [vmem:[%s869_s6] ss:$0 sm:$0xff]  ;;  %v223_v20 = vld [vmem:[#allocation7] sm:$0xff]  ;;  %v260_v23 = vld [vmem:[#allocation9 + $0x8] sm:$0xff]  ;;  %s294_s6 = sld [smem:[#allocation2]] }
  0x28   :  { %183 = vmatpush.msra.mxu0 %v155_v4  ;;  %v259_v22 = vld [vmem:[#allocation9] sm:$0xff]  ;;  %v313_v24 = vld [vmem:[#allocation13 + $0x18] sm:$0xff]  ;;  %v311_v26 = vld [vmem:[#allocation13 + $0x8] sm:$0xff] }
  0x29   :  { %214 = vmatpush.msra.mxu1 %v193_v5  ;;  %v312_v25 = vld [vmem:[#allocation13 + $0x10] sm:$0xff]  ;;  %v310_v27 = vld [vmem:[#allocation13] sm:$0xff] }
  0x2a   :  { %184 = vmatpush.msra.mxu0 %v154_v6  ;;  %v478_v28 = vld [vmem:[%s871_s8] ss:$0 sm:$0xff]  ;;  %v482_v58 = vpop.eup %481 }
  0x2b   :  { %215 = vmatpush.msra.mxu1 %v192_v7  ;;  %444 = vmatmul.msk.f32.vlgmr.msra.gmra.mxu0 %vm162_vm0, %v152_v8  ;;  %v479_v29 = vld [vmem:[%s872_s9] ss:$0 sm:$0xff]  ;;  %v373_v59 = vmul.f32 16.0, %v482_v58  ;;  %vm377_vm6 = vweird.f32 %v482_v58 }
  0x2c   :  { %446 = vmatmul.msk.f32.vlgmr.msra.gmra.mxu1 %vm162_vm0, %v152_v8  ;;  %v305_v34 = vstv %s452_s7  ;;  %v480_v49 = vld [vmem:[%s874_s11] ss:$0 sm:$0xff] }
  0x2d   :  { %v298_v31 = vstv %s294_s6  ;;  %v374_v2 = vsub.f32 1.0, %v373_v59 }
  0x33   :  { %445 = vmatmul.msk.f32.gmra.mxu0 %vm162_vm0, %v153_v9 }
  0x34   :  { %447 = vmatmul.msk.f32.gmra.mxu1 %vm162_vm0, %v153_v9  ;;  %v375_v9 = vmul.f32 %v482_v58, %v374_v2 }
  0xa8   :  { %v186_v10 = vpop.f32.mrf.mxu0 }
  0xa9   :  { %v217_v11 = vpop.f32.mrf.mxu1  ;;  %v187_v18 = vadd.f32 %v476_v13, %v186_v10 }
  0xaa   :  { %v218_v19 = vadd.f32 %v477_v12, %v217_v11 }
  0xb0   :  { %v189_v14 = vpop.f32.mrf.mxu0 }
  0xb1   :  { %v220_v15 = vpop.f32.mrf.mxu1  ;;  %v190_v16 = vadd.f32 %v476_v13, %v189_v14  ;;  %v376_v13 = vadd.f32 %v482_v58, %v375_v9 }
  0xb2   :  { %v221_v17 = vadd.f32 %v477_v12, %v220_v15 }
  0xb3   :  { %250 = vmatpush.msrb.mxu0 %v190_v16  ;;  %457 = vmatpush.msra.mxu2 %v190_v16 }
  0xb4   :  { %285 = vmatpush.msrb.mxu1 %v221_v17  ;;  %459 = vmatpush.msra.mxu3 %v221_v17 }
  0xb5   :  { %251 = vmatpush.msrb.mxu0 %v187_v18  ;;  %458 = vmatpush.msra.mxu2 %v187_v18  ;;  %v378_v18 = vsel %vm377_vm6, %v482_v58, %v376_v13 }
  0xb6   :  { %286 = vmatpush.msrb.mxu1 %v218_v19  ;;  %460 = vmatpush.msra.mxu3 %v218_v19 }
  0xb7   :  { %448 = vmatmul.msk.f32.vlgmr.msrb.gmra.mxu0 %vm229_vm1, %v223_v20  ;;  %449 = vmatmul.msk.f32.vlgmr.msra.gmra.mxu2 %vm229_vm1, %v224_v21  ;;  %v390_v21 = vld [vmem:[%s875_s12] sm:$0x1]  ;;  %s699_s12 = smov [#allocation15]  }
  0xb8   :  { %450 = vmatmul.msk.f32.vlgmr.msrb.gmra.mxu1 %vm229_vm1, %v259_v22  ;;  %451 = vmatmul.msk.f32.vlgmr.msra.gmra.mxu3 %vm229_vm1, %v260_v23  ;;  %s425_s29 = sshll.u32 %s699_s12, 4  ;;  %s426_s29 = int_to_ptr.vmem [resolvable:$true] %s425_s29 }
  0xb9   :  { %342 = vmatpush.msrb.mxu2 %v313_v24  ;;  %461 = vmatpush.msrb.mxu3 %v313_v24 }
  0xbb   :  { %343 = vmatpush.msrb.mxu2 %v312_v25  ;;  %462 = vmatpush.msrb.mxu3 %v312_v25 }
  0xbd   :  { %344 = vmatpush.msrb.mxu2 %v311_v26  ;;  %463 = vmatpush.msrb.mxu3 %v311_v26 }
  0xbf   :  { %345 = vmatpush.msrb.mxu2 %v310_v27  ;;  %464 = vmatpush.msrb.mxu3 %v310_v27 }
 0x134   :  { %v253_v30 = vpop.f32.mrf.mxu0 }
 0x135   :  { %v254_v32 = vadd.f32 %v478_v28, %v253_v30  ;;  %v288_v33 = vpop.f32.mrf.mxu1 }
 0x136   :  { %v289_v35 = vadd.f32 %v479_v29, %v288_v33 }
 0x137   :  { %vm296_vm2 = vcmp.gt.f32.partialorder %v254_v32, 0.0  ;;  %v299_v36 = vmul.f32 %v298_v31, %v254_v32 }
 0x138   :  { %vm303_vm3 = vcmp.gt.f32.partialorder %v289_v35, 0.0  ;;  %v306_v37 = vmul.f32 %v305_v34, %v289_v35 }
 0x139   :  { %v825_v38 = vsel %vm296_vm2, %v254_v32, %v299_v36 }
 0x13a   :  { %453 = vmatmul.msk.f32.vlgmr.msrb.gmra.mxu2 %vm162_vm0, %v825_v38  ;;  %v256_v39 = vpop.f32.mrf.mxu2  ;;  %v829_v40 = vsel %vm303_vm3, %v289_v35, %v306_v37 }
 0x13b   :  { %v257_v41 = vadd.f32 %v478_v28, %v256_v39  ;;  %455 = vmatmul.msk.f32.vlgmr.msrb.gmra.mxu3 %vm162_vm0, %v829_v40  ;;  %v291_v42 = vpop.f32.mrf.mxu3 }
 0x13c   :  { %v292_v43 = vadd.f32 %v479_v29, %v291_v42 }
 0x13d   :  { %v300_v44 = vmul.f32 %v298_v31, %v257_v41  ;;  %vm297_vm4 = vcmp.gt.f32.partialorder %v257_v41, 0.0 }
 0x13e   :  { %v307_v45 = vmul.f32 %v305_v34, %v292_v43  ;;  %vm304_vm5 = vcmp.gt.f32.partialorder %v292_v43, 0.0 }
 0x13f   :  { %v835_v47 = vsel %vm297_vm4, %v257_v41, %v300_v44 }
 0x140   :  { %v833_v46 = vsel %vm304_vm5, %v292_v43, %v307_v45 }
 0x142   :  { %454 = vmatmul.msk.f32.gmra.mxu2 %vm162_vm0, %v835_v47 }
 0x143   :  { %456 = vmatmul.msk.f32.gmra.mxu3 %vm162_vm0, %v833_v46 }
 0x1bd   :  { %v347_v48 = vpop.f32.mrf.mxu2 }
 0x1be   :  { %v353_v50 = vpop.f32.mrf.mxu3  ;;  %v348_v51 = vadd.f32 %v480_v49, %v347_v48 }
 0x1bf   :  { %v354_v53 = vadd.f32 %v480_v49, %v353_v50 }
 0x1c0   :  { %483 = vtanh.f32 %v348_v51 }
 0x1c1   :  { %485 = vtanh.f32 %v354_v53 }
 0x1c5   :  { %v350_v54 = vpop.f32.mrf.mxu2 }
 0x1c6   :  { %v351_v55 = vadd.f32 %v480_v49, %v350_v54  ;;  %v356_v56 = vpop.f32.mrf.mxu3  ;;  %v484_v60 = vpop.eup %483 }
 0x1c7   :  { %v357_v57 = vadd.f32 %v480_v49, %v356_v56  ;;  %v486_v61 = vpop.eup %485  ;;  %v363_v0 = vsel %vm162_vm0, %v484_v60, 0.0 }
 0x1c8   :  { %487 = vtanh.f32 %v351_v55  ;;  %v380_v3 = vsel %vm162_vm0, %v486_v61, 0.0 }
 0x1c9   :  { %489 = vtanh.f32 %v357_v57 }
 0x1ce   :  { %v488_v62 = vpop.eup %487 }
 0x1cf   :  { %v490_v63 = vpop.eup %489  ;;  %v364_v1 = vsel %vm162_vm0, %v488_v62, 0.0 }
 0x1d0   :  { %v365_v4 = vadd.f32 %v364_v1, %v363_v0  ;;  %v381_v5 = vsel %vm162_vm0, %v490_v63, 0.0 }
 0x1d1   :  { %v382_v6 = vadd.f32 %v381_v5, %v380_v3 }
 0x1d2   :  { %v366_v7 = vrot.slane %v365_v4, 4 }
 0x1d3   :  { %v383_v8 = vrot.slane %v382_v6, 4 }
 0x1d4   :  { %v367_v10 = vadd.f32 %v366_v7, %v365_v4 }
 0x1d5   :  { %v384_v11 = vadd.f32 %v383_v8, %v382_v6 }
 0x1d6   :  { %v368_v12 = vrot.slane %v367_v10, 2 }
 0x1d7   :  { %v385_v14 = vrot.slane %v384_v11, 2 }
 0x1d8   :  { %v369_v15 = vadd.f32 %v368_v12, %v367_v10 }
 0x1d9   :  { %v386_v16 = vadd.f32 %v385_v14, %v384_v11 }
 0x1da   :  { %v370_v17 = vrot.slane %v369_v15, 1 }
 0x1db   :  { %v387_v19 = vrot.slane %v386_v16, 1 }
 0x1dc   :  { %v371_v20 = vadd.f32 %v370_v17, %v369_v15 }
 0x1dd   :  { %v388_v23 = vadd.f32 %v387_v19, %v386_v16 }
 0x1de   :  { %v379_v22 = vmul.f32 %v378_v18, %v371_v20 }
 0x1df   :  { %v389_v26 = vmul.f32 %v388_v23, %v378_v18 }
 0x1e0   :  { %v391_v24 = vmul.f32 %v390_v21, %v379_v22 }
 0x1e1   :  { %v396_v27 = vmul.f32 %v390_v21, %v389_v26 }
 0x1e2   :  { %v393_v25 = vsel %vm392_vm7, %v391_v24, 0.0 }
 0x1e3   :  { %394 = vadd.xlane.f32.xlu0 %v393_v25  ;;  %v397_v28 = vsel %vm392_vm7, %v396_v27, 0.0 }
 0x1eb   :  { %398 = vadd.xlane.f32.xlu0 %v397_v28 }
 0x256   :  { %v395_v29 = vpop.xlane.xlu0 %394 }
 0x25e   :  { %v399_v30 = vpop.xlane.xlu0 %398 }
 0x25f   :  { %v400_v31 = vmax.f32 %v395_v29, %v399_v30 }
 0x261   :  { %v401_v32 = vsub.f32 %v395_v29, %v400_v31  ;;  %v404_v33 = vsub.f32 %v399_v30, %v400_v31 }
 0x263   :  { %v402_v34 = vmul.f32 1.442695, %v401_v32  ;;  %v405_v35 = vmul.f32 1.442695, %v404_v33 }
 0x265   :  { %491 = vpow2.f32 %v402_v34 }
 0x266   :  { %493 = vpow2.f32 %v405_v35 }
 0x26b   :  { %v492_v36 = vpop.eup %491 }
 0x26c   :  { %v494_v37 = vpop.eup %493 }
 0x26d   :  { %v407_v39 = vadd.f32 %v494_v37, %v492_v36 }
 0x26f   :  { %495 = vrcp.f32 %v407_v39 }
 0x275   :  { %v496_v41 = vpop.eup %495 }
 0x276   :  { %v410_v42 = vmul.f32 %v496_v41, %v494_v37  ;;  %v409_v43 = vmul.f32 %v496_v41, %v492_v36 }
 0x278   :  { %v414_v44 = vperm.slane %v410_v42, 0  ;;  %v411_v45 = vperm.slane %v409_v43, 0 }
 0x27a   :  { %v412_v48 = vmul.f32 %v411_v45, %v825_v38  ;;  %v413_v49 = vmul.f32 %v411_v45, %v835_v47  ;;  %v415_v50 = vmul.f32 %v414_v44, %v829_v40  ;;  %v416_v51 = vmul.f32 %v414_v44, %v833_v46 }
 0x27c   :  { %v417_v52 = vadd.f32 %v415_v50, %v412_v48  ;;  %v418_v53 = vadd.f32 %v416_v51, %v413_v49 }
 0x27e   :  { %419 = vst.msk [vmem:[#allocation15] sm:$0xff] %vm162_vm0, %v417_v52 }
 0x27f   :  { %420 = vst.msk [vmem:[#allocation15 + $0x8] sm:$0xff] %vm162_vm0, %v418_v53 }
 0x280   :  { %433 = dma.vmem_to_hbm [thread:$0]  %s426_s29, 256, %s428_s14, [#allocation4], %s690_s16, %s690_s16, %s691_s17  }
 0x281   :  { %687 = dma.done.wait [#allocation4], 256  }
 0x282   :  { %688 = vsyncadd [#allocation4], 4294967040 }
 0x283   :  { %438 = vsyncpa [#allocation3], 1 }
 0x284   :  { %439 = vsyncpa [#allocation8], 1 }
 0x285   :  { %440 = vsyncpa [#allocation11], 1 }
 0x286   :  { %441 = vsyncpa [#allocation14], 1 }
 0x287   :  { %442 = vsyncpa [#allocation4], 1 }
 0x288   :  { %443 = vsyncpa [#allocation5], 1 }

</bundles_post_ra>
